<compile_context>
chip_gen: v6e
topology: v6e:2x2x1
jax: 0.10.0
libtpu: 0.0.40
codegen_flags: <defaults>
</compile_context>

<pallas_src>
import jax
import jax.numpy as jnp
from jax import lax
from jax.experimental import pallas as pl
from jax.experimental.pallas import tpu as pltpu


def _round_up(x, m):
    return ((x + m - 1) // m) * m


def _adsh_sb_kernel(s_ref, b_ref, sb_ref):
    """Accumulate one (i, j) tile of S @ B.

    s_ref  : (TQ, TD)   int8  tile (i, j) of S   (dominant HBM stream, 1 B/elem)
    b_ref  : (TD, L)    bf16  rows j*TD.. of the zero-padded B (small stream)
    sb_ref : (1, TQ, L) f32   per-i accumulator (output-resident across j)
    """
    j = pl.program_id(1)

    # int8 -> f32 -> bf16 widen (known-good convert path); +-1 stays exact.
    s = s_ref[...].astype(jnp.float32).astype(jnp.bfloat16)
    # bf16 x bf16 -> f32 on the MXU; values are integer-valued so the result is
    # exact (|sum| << 2^24).
    prod = jnp.dot(s, b_ref[...], preferred_element_type=jnp.float32)  # (TQ, L)

    @pl.when(j == 0)
    def _init():
        sb_ref[...] = prod[None]

    @pl.when(j > 0)
    def _accum():
        sb_ref[...] += prod[None]


def adsh_loss(F, B, S, omega, *, code_length, gamma, tile_q=512, tile_d=2048):
    """JAX wrapper mirroring ADSH_Loss.forward. Returns (loss, hash_loss, quant_loss).

    Assumes (as in ADSH) that B and S contain only +-1; this makes the int8/bf16
    HBM compression exact and the s^2 = 1 algebraic expansion of the hash term valid.
    """
    # TODO(synk): if S is ever not +-1, replace the cl^2*nq*nd constant below with
    # a streamed sum(S^2) (one extra cheap reduce over the S tiles).
    nq, L = F.shape
    nd, Lb = B.shape
    assert L == Lb and S.shape == (nq, nd) and omega.shape == (nq,)

    F32 = jnp.asarray(F, jnp.float32)
    B32 = jnp.asarray(B, jnp.float32)
    S8 = jnp.asarray(S, jnp.int8)                 # +-1: exact, 4x less HBM than f32

    TQ = min(_round_up(tile_q, 32), _round_up(nq, 32))
    TD = min(_round_up(tile_d, 128), _round_up(nd, 128))
    n_i = pl.cdiv(nq, TQ)
    n_j = pl.cdiv(nd, TD)
    nd_pad = n_j * TD

    # Zero-pad B along the database axis (O(nd*L), trivial).  Padded rows are 0,
    # so the garbage columns of a ragged edge S tile contribute exactly 0 to S@B
    # -> no in-kernel masking needed anywhere.
    B16 = jnp.zeros((nd_pad, L), jnp.bfloat16).at[:nd].set(B32.astype(jnp.bfloat16))

    sb = pl.pallas_call(
        _adsh_sb_kernel,
        out_shape=jax.ShapeDtypeStruct((n_i, TQ, L), jnp.float32),
        grid=(n_i, n_j),
        in_specs=[
            pl.BlockSpec((TQ, TD), lambda i, j: (i, j)),   # S (dominant stream)
            pl.BlockSpec((TD, L), lambda i, j: (j, 0)),    # zero-padded B
        ],
        out_specs=pl.BlockSpec((1, TQ, L), lambda i, j: (i, 0, 0)),  # per-i resident
        compiler_params=pltpu.CompilerParams(
            dimension_semantics=("parallel", "arbitrary"),
            vmem_limit_bytes=32 * 1024 * 1024),
    )(S8, B16)

    # Drop padded (garbage) query rows; all remaining math is tiny (O(nq*L), O(L^2)).
    SB = sb.reshape(n_i * TQ, L)[:nq]

    hp = lax.Precision.HIGHEST
    cl = float(code_length)
    # sum((cl*S - F@B.T)^2) = cl^2*nq*nd + sum(F * (F @ (B^T B))) - 2*cl*<F, S@B>
    gram = jnp.dot(B32.T, B32, precision=hp)                    # (L, L), exact ints
    fb2 = jnp.sum(jnp.dot(F32, gram, precision=hp) * F32)
    cross = jnp.sum(F32 * SB)
    hash_sum = cl * cl * float(nq) * float(nd) + fb2 - 2.0 * cl * cross

    # Quantization term: O(nq*L), left entirely to XLA per the review.
    quant_sum = jnp.sum((F32 - B32[omega, :]) ** 2)

    denom = float(nq) * float(nd)
    hash_loss = hash_sum / denom / cl * 12.0
    quant_loss = quant_sum / denom * gamma / cl * 12.0
    return hash_loss + quant_loss, hash_loss, quant_loss


def adsh_loss_ref(F, B, S, omega, *, code_length, gamma):
    """Pure-JAX reference (mirrors the PyTorch f32 forward)."""
    nq, nd = F.shape[0], B.shape[0]
    G = jnp.dot(F, B.T, precision=lax.Precision.HIGHEST)
    hash_loss = jnp.sum((code_length * S - G) ** 2) / (nq * nd) / code_length * 12.0
    quant_loss = jnp.sum((F - B[omega, :]) ** 2) / (nq * nd) * gamma / code_length * 12.0
    return hash_loss + quant_loss, hash_loss, quant_loss


if __name__ == "__main__":
    # Module hyper-parameters (deterministic, in-script).
    code_length = 32
    num_roll = 4       # stored on the module but unused in forward
    gamma = 200.0

    # Small synthetic shapes implied by the forward; ragged on both axes so the
    # padded-B / sliced-output edge handling is exercised.
    num_query = 300
    num_db = 1200

    key = jax.random.PRNGKey(0)
    kf, kb, ks, ko = jax.random.split(key, 4)
    F = jnp.tanh(jax.random.normal(kf, (num_query, code_length), jnp.float32))
    B = jnp.sign(jax.random.normal(kb, (num_db, code_length), jnp.float32))
    B = jnp.where(B == 0, 1.0, B)
    S = jnp.sign(jax.random.normal(ks, (num_query, num_db), jnp.float32))
    S = jnp.where(S == 0, 1.0, S)
    omega = jax.random.randint(ko, (num_query,), 0, num_db, jnp.int32)

    loss_r, hash_r, quant_r = adsh_loss_ref(
        F, B, S, omega, code_length=code_length, gamma=gamma)

    # Small tiles -> multi-tile (3x3) grid with ragged edges and j-accumulation.
    out_small = adsh_loss(F, B, S, omega, code_length=code_length, gamma=gamma,
                          tile_q=128, tile_d=512)
    # Production-default tiles (clamped to the small test shapes -> 1x1 grid).
    out_big = adsh_loss(F, B, S, omega, code_length=code_length, gamma=gamma)
    jax.block_until_ready((out_small, out_big))

    for loss, hash_loss, quant_loss in (out_small, out_big):
        assert jnp.allclose(loss, loss_r, rtol=3e-4, atol=1e-2), (loss, loss_r)
        assert jnp.allclose(hash_loss, hash_r, rtol=3e-4, atol=1e-2), (hash_loss, hash_r)
        assert jnp.allclose(quant_loss, quant_r, rtol=3e-4, atol=1e-2), (quant_loss, quant_r)

    print("KERNEL_OK")
</pallas_src>

<mosaic_0001>
module attributes {stable_mosaic.version = 11 : i64} {
  func.func @_adsh_sb_kernel(%arg0: i32, %arg1: i32, %arg2: memref<128x512xi8, #tpu.memory_space<vmem>>, %arg3: memref<512x32xbf16, #tpu.memory_space<vmem>>, %arg4: memref<1x128x32xf32, #tpu.memory_space<vmem>>) attributes {dimension_semantics = [#tpu.dimension_semantics<parallel>, #tpu.dimension_semantics<arbitrary>], iteration_bounds = array<i64: 3, 3>, scalar_prefetch = 0 : i64, scratch_operands = 0 : i64, tpu.core_type = #tpu.core_type<tc>, window_params = [{transform_indices = @transform_0, window_bounds = array<i64: 128, 512>}, {transform_indices = @transform_1, window_bounds = array<i64: 512, 32>}, {transform_indices = @transform_2, window_bounds = array<i64: 1, 128, 32>}]} {
    %c0 = arith.constant 0 : index
    %c0_0 = arith.constant 0 : index
    %0 = vector.load %arg2[%c0, %c0_0] : memref<128x512xi8, #tpu.memory_space<vmem>>, vector<128x512xi8>
    %1 = arith.sitofp %0 : vector<128x512xi8> to vector<128x512xf32>
    %2 = arith.truncf %1 : vector<128x512xf32> to vector<128x512xbf16>
    %c0_1 = arith.constant 0 : index
    %c0_2 = arith.constant 0 : index
    %3 = vector.load %arg3[%c0_1, %c0_2] : memref<512x32xbf16, #tpu.memory_space<vmem>>, vector<512x32xbf16>
    %cst = arith.constant dense<0.000000e+00> : vector<128x32xf32>
    %4 = tpu.matmul %2, %3, %cst {dimension_numbers = #tpu.dot_dimension_numbers<[1], [0], [0], [1], [0, 0, 1, 1], [], []>} : vector<128x512xbf16>, vector<512x32xbf16>, vector<128x32xf32> -> vector<128x32xf32>
    %c0_i32 = arith.constant 0 : i32
    %5 = arith.cmpi eq, %arg1, %c0_i32 : i32
    %6 = arith.extui %5 : i1 to i32
    %c0_i32_3 = arith.constant 0 : i32
    %7 = arith.cmpi ne, %6, %c0_i32_3 : i32
    scf.if %7 {
      %11 = vector.shape_cast %4 : vector<128x32xf32> to vector<1x128x32xf32>
      %c0_6 = arith.constant 0 : index
      %c0_7 = arith.constant 0 : index
      %c0_8 = arith.constant 0 : index
      %12 = vector.load %arg4[%c0_6, %c0_7, %c0_8] : memref<1x128x32xf32, #tpu.memory_space<vmem>>, vector<1x128x32xf32>
      tpu.vector_store %arg4[%c0_6, %c0_7, %c0_8], %11 {strides = array<i32>} : memref<1x128x32xf32, #tpu.memory_space<vmem>>, vector<1x128x32xf32>,
    } else {
    }
    %c0_i32_4 = arith.constant 0 : i32
    %8 = arith.cmpi sgt, %arg1, %c0_i32_4 : i32
    %9 = arith.extui %8 : i1 to i32
    %c0_i32_5 = arith.constant 0 : i32
    %10 = arith.cmpi ne, %9, %c0_i32_5 : i32
    scf.if %10 {
      %c0_6 = arith.constant 0 : index
      %c0_7 = arith.constant 0 : index
      %c0_8 = arith.constant 0 : index
      %11 = vector.load %arg4[%c0_6, %c0_7, %c0_8] : memref<1x128x32xf32, #tpu.memory_space<vmem>>, vector<1x128x32xf32>
      %12 = vector.shape_cast %4 : vector<128x32xf32> to vector<1x128x32xf32>
      %13 = arith.addf %11, %12 : vector<1x128x32xf32>
      %c0_9 = arith.constant 0 : index
      %c0_10 = arith.constant 0 : index
      %c0_11 = arith.constant 0 : index
      %14 = vector.load %arg4[%c0_9, %c0_10, %c0_11] : memref<1x128x32xf32, #tpu.memory_space<vmem>>, vector<1x128x32xf32>
      tpu.vector_store %arg4[%c0_9, %c0_10, %c0_11], %13 {strides = array<i32>} : memref<1x128x32xf32, #tpu.memory_space<vmem>>, vector<1x128x32xf32>,
    } else {
    }
    return
  }
  func.func @transform_0(%arg0: i32, %arg1: i32) -> (i32, i32) {
    %c0_i32 = arith.constant 0 : i32
    return %arg0, %arg1 : i32, i32
  }
  func.func @transform_1(%arg0: i32, %arg1: i32) -> (i32, i32) {
    %c0_i32 = arith.constant 0 : i32
    %c0_i32_0 = arith.constant 0 : i32
    return %arg1, %c0_i32 : i32, i32
  }
  func.func @transform_2(%arg0: i32, %arg1: i32) -> (i32, i32, i32) {
    %c0_i32 = arith.constant 0 : i32
    %c0_i32_0 = arith.constant 0 : i32
    %c0_i32_1 = arith.constant 0 : i32
    return %arg0, %c0_i32, %c0_i32_0 : i32, i32, i32
  }
}

</mosaic_0001>

<bundles_post_ra>
// kernel: tpu_custom_call.1
= control target key start
LH: loop header
LB: loop body
LE: loop exit
PB: predicated region body
PF: predicated region fallthrough
CT: control target
= control target key end

     0   :  { %s3672_s0 = inlined_call_operand.vmem [shape: s8[300,1200], index: 0, kind: input, shape index: {}]   ;;  %s3673_s1 = inlined_call_operand.vmem [shape: bf16[1536,32], index: 1, kind: input, shape index: {}]   ;;  %s3674_s2 = inlined_call_operand.vmem [shape: f32[3,128,32], index: 2, kind: output, shape index: {}]  }
   0x1   :  { %3681 = sst [smem:[#allocation10_spill]] %s3672_s0 }
   0x2   :  { %s3024_s9 = smov 0   ;;  %s3026_s10 = smov 0  }
   0x3   :  { %s3028_s11 = smov 0   ;;  %s3030_s12 = smov 0  }
   0x4   :  { %s3032_s13 = smov 0   ;;  %s3034_s14 = smov 0  }
   0x5   :  { %s3036_s15 = smov 0  }
   0x6 LB: > { %3682 = sst [smem:[#allocation3_spill]] %s2877_s9  ;;  %s21_s16 = sadd.s32 1, %s2893_s13  ;;  %s2901_s15 = sphi %s3036_s15, %s12_s15   ;;  %s2897_s14 = sphi %s3034_s14, %s3714_s14   ;;  %s2893_s13 = sphi %s3032_s13, %s3713_s13   ;;  %s2889_s12 = sphi %s3030_s12, %s3712_s12   ;;  %s2885_s11 = sphi %s3028_s11, %s3711_s11   ;;  %s2881_s10 = sphi %s3026_s10, %s3710_s10   ;;  %s2877_s9 = sphi %s3024_s9, %s3709_s9  }
   0x7   : > { %3683 = sst [smem:[#allocation4_spill]] %s2881_s10  ;;  %p22_p0 = scmp.ge.s32.totalorder %s21_s16, 3 }
   0x8   : > { %3684 = sst [smem:[#allocation5_spill]] %s2893_s13  ;;  %s24_s17 = sadd.s32 1, %s2897_s14 }
   0x9   : > { %3685 = sst [smem:[#allocation6_spill]] %s2897_s14  ;;  %p40_p1 = scmp.ne.s32.totalorder %s2881_s10, %s2877_s9 }
   0xa   : > { %p41_p2 = scmp.eq.s32.totalorder %s2901_s15, 0  ;;  %s3716_s16 = smov (%p22_p0, %s21_s16), 0 }
   0xb   : > { %3686 = sst [smem:[#allocation7_spill]] %s3716_s16  ;;  %s3718_s17 = smov (!%p22_p0, %s24_s17), %s2897_s14 }
   0xc   : > { %p42_p3 = por %p41_p2, %p40_p1  ;;  %p26_p4 = scmp.ge.s32.totalorder %s3718_s17, 3 }
   0xd   : > { %s29_s18 = ssub.s32 %s2893_s13, %s3716_s16  ;;  %s33_s21 = sadd.s32 1, %s2881_s10 }
   0xe   : > { %s3720_s17 = smov (%p26_p4, %s3718_s17), 0  ;;  %p1929_p6 = scmp.ge.s32.totalorder %s2901_s15, 9 }
   0xf   : > { %3687 = sst [smem:[#allocation8_spill]] %s3720_s17  ;;  %s28_s19 = ssub.s32 %s2897_s14, %s3720_s17 }
  0x10   : > { %s30_s20 = sor.u32 %s29_s18, %s28_s19 }
  0x11   : > { %p31_p5 = scmp.eq.s32.totalorder %s30_s20, 0  ;;  %118 = sbr.rel (%p1929_p6) target bundleno = 174 (0xae), region = 16 }
  0x13   : > { %s3075_s22 = scalar_select %p31_p5, %s2881_s10, %s33_s21  }
  0x15   : > { %3688 = sst [smem:[#allocation9_spill]] %s3075_s22 }
  0x16   : > { %121 = sbr.rel (!%p42_p3) target bundleno = 174 (0xae), region = 20  ;;  %s123_s23 = sand.u32 (%p42_p3), 1, %s2881_s10  }
  0x17   : > { %s1931_s24 = sshll.u32 (%p42_p3), %s2897_s14, 4  ;;  %s1930_s25 = sshll.u32 (%p42_p3), %s123_s23, 7 }
  0x18   : > { %s1932_s26 = sshll.u32 (%p42_p3), %s2893_s13, 2  ;;  %s128_s27 = ssub.s32 (%p42_p3), 38, %s1931_s24 }
  0x19   : > { %p129_p7 = scmp.lt.s32.totalorder (%p42_p3), %s128_s27, 16  ;;  %s132_s28 = ssub.s32 (%p42_p3), 10, %s1932_s26 }
  0x1a   : > { %p133_p8 = scmp.lt.s32.totalorder (%p42_p3), %s132_s28, 4  ;;  %s2204_s29 = smul.u32 (%p42_p3), 160, %s2897_s14 }
  0x1b   : > { %s3722_s27 = smov (!%p129_p7, %s128_s27), 16  ;;  %s3689_s0 = sld [smem:[#allocation10_spill]] }
  0x1c   : > { %s3724_s28 = smov (!%p133_p8, %s132_s28), 4  ;;  %s1933_s30 = sshll.u32 %s3722_s27, 5 }
  0x1d   : > { %s138_s3 = sadd.s32 %s2204_s29, %s1932_s26  ;;  %s135_s4 = smul.u32 %s1933_s30, %s3724_s28 }
  0x1e   : > { %s1936_s5 = sshll.u32 %s138_s3, 1  ;;  %s3090_s18 = sshll.u32 %s3724_s28, 1 }
  0x1f   : > { %s3092_s19 = scalar_lea.vmem [#allocation2], %s1930_s25   ;;  %p1938_p9 = scmp.eq.s32.totalorder %s135_s4, 0 }
  0x20   : > { %p145_p10 = scmp.lt.u32.totalorder (!%p1938_p9), %s3090_s18, 8 }
  0x21   : > { %s3088_s8 = scalar_lea.vmem %s3689_s0, %s1936_s5   ;;  %144 = sbr.rel (%p1938_p9) target bundleno = 174 (0xae), region = 24 }
  0x26   : > { %148 = sbr.rel (%p145_p10) target bundleno = 130 (0x82), region = 28  ;;  %s3096_s20 = sand.u32 (!%p145_p10), 7, %s3090_s18  }
  0x27   : > { %p229_p11 = scmp.eq.s32.totalorder (!%p145_p10), %s3096_s20, 0  ;;  %p1939_p12 = scmp.ne.s32.totalorder (!%p145_p10), %s3096_s20, 0 }
  0x2b   : > { %232 = sbr.rel (%p1939_p12) target bundleno = 66 (0x42), region = 50  ;;  %s233_s21 = sshrl.u32 (!%p1939_p12), %s3090_s18, 3 }
  0x2c   : > { %s235_s23 = sshrl.u32 (!%p1939_p12), %s233_s21, 2  ;;  %s3101_s24 = sand.u32 (!%p1939_p12), 3, %s233_s21  }
  0x2d   : > { %s2068_s25 = sshll.u32 (!%p1939_p12), %s235_s23, 9  ;;  %s3105_s28 = smul.u32 (!%p1939_p12), %s3101_s24, %s3722_s27 }
  0x2e   : > { %s440_s26 = sshra.s32 (!%p1939_p12), %s2068_s25, 4 }
  0x2f   : > { %s3108_s29 = scalar_lea.vmem (!%p1939_p12), %s3088_s8, %s440_s26   ;;  %s3111_s30 = scalar_lea.vmem (!%p1939_p12), %s3092_s19, %s440_s26 [#allocation2]  }
  0x30   : > { %p1954_p13 = scmp.le.s32.totalorder %s3105_s28, 0 }
  0x31   : > { %s3690_s3 = smov (!%p1954_p13), %s3111_s30  ;;  %s3691_s4 = smov (!%p1954_p13), %s3108_s29 }
  0x32   : > { %1771 = sbr.rel (%p1954_p13) target bundleno = 66 (0x42), region = 214  ;;  %s3120_s5 = smov (!%p1954_p13), 0  }
  0x33   : > { %s3122_s6 = smov (!%p1954_p13), 0   ;;  %s3124_s7 = smov (!%p1954_p13), 0  }
  0x37 LB: >> { %v458_v0 = vld [vmem:[%s2909_s4] sm:$0xff]  ;;  %s460_s21 = sadd.s32 1, %s2913_s5  ;;  %s463_s23 = sadd.s32 1, %s2917_s6  ;;  %s2921_s7 = sphi %s3124_s7, %s451_s7   ;;  %s2917_s6 = sphi %s3122_s6, %s3693_s6   ;;  %s2913_s5 = sphi %s3120_s5, %s3692_s5   ;;  %s2909_s4 = sphi %s3691_s4, %s473_s4   ;;  %s2905_s3 = sphi %s3690_s3, %s474_s3  }
  0x38   : >> { %459 = vst [vmem:[%s2905_s3] sm:$0xff] %v458_v0  ;;  %p461_p0 = scmp.ge.s32.totalorder %s460_s21, %s3101_s24  ;;  %s451_s7 = sadd.s32 1, %s2921_s7  }
  0x39   : >> { %p450_p2 = scmp.ge.s32.totalorder %s451_s7, %s3105_s28 }
  0x3a   : >> { %s3726_s21 = smov (%p461_p0, %s460_s21), 0  ;;  %s3728_s23 = smov (!%p461_p0, %s463_s23), %s2917_s6 }
  0x3b   : >> { %p465_p1 = scmp.ge.s32.totalorder %s3728_s23, %s3722_s27  ;;  %s1955_s25 = sshll.u32 %s3726_s21, 3 }
  0x3c   : >> { %s3692_s5 = smov %s3726_s21 }
  0x3d   : >> { %s3730_s23 = smov (%p465_p1, %s3728_s23), 0  ;;  %453 = sbr.rel (!%p450_p2) target bundleno = 55 (0x37), region = 220 }
  0x3e   : >> { %s467_s26 = smul.u32 20, %s3730_s23  ;;  %s1956_s0 = sshll.u32 %s3730_s23, 3 }
  0x3f   : >> { %s472_s17 = sadd.s32 %s1956_s0, %s1955_s25  ;;  %s3693_s6 = smov %s3730_s23 }
  0x40   : >> { %s469_s16 = sadd.s32 %s1955_s25, %s467_s26  ;;  %s474_s3 = scalar_lea.vmem %s3111_s30, %s472_s17 [#allocation2]  }
  0x41   : >> { %s473_s4 = scalar_lea.vmem %s3108_s29, %s469_s16  }
  0x42 PF: > { %477 = sbr.rel (%p229_p11) target bundleno = 130 (0x82), region = 75  ;;  %s479_s0 = ssub.s32 (!%p229_p11), %s3090_s18, %s3096_s20 }
  0x43   : > { %s483_s16 = sshrl.u32 (!%p229_p11), %s3090_s18, 3  ;;  %s3152_s17 = scalar_lea.vmem (!%p229_p11), %s3088_s8, %s479_s0  }
  0x44   : > { %s3155_s7 = scalar_lea.vmem (!%p229_p11), %s3092_s19, %s479_s0 [#allocation2]   ;;  %s3158_s24 = sshrl.u32 (!%p229_p11), %s3722_s27, 4 }
  0x45   : > { %s485_s28 = sshrl.u32 (!%p229_p11), %s483_s16, 2  ;;  %s3161_s29 = sand.u32 (!%p229_p11), 15, %s3722_s27  }
  0x46   : > { %s3165_s4 = sand.u32 (!%p229_p11), 3, %s483_s16   ;;  %s2071_s5 = sshll.u32 (!%p229_p11), %s485_s28, 9 }
  0x47   : > { %s690_s6 = sshra.s32 %s2071_s5, 4  ;;  %s3169_s21 = smul.u32 %s3165_s4, %s3722_s27 }
  0x48   : > { %s3172_s23 = scalar_lea.vmem %s3088_s8, %s690_s6   ;;  %s3175_s25 = scalar_lea.vmem %s3092_s19, %s690_s6 [#allocation2]  }
  0x49   : > { %p1972_p3 = scmp.le.s32.totalorder %s3169_s21, 0 }
  0x4a   : > { %s3694_s26 = smov (!%p1972_p3), %s3175_s25  ;;  %s3695_s0 = smov (!%p1972_p3), %s3172_s23 }
  0x4b   : > { %1822 = sbr.rel (%p1972_p3) target bundleno = 91 (0x5b), region = 247  ;;  %s3184_s16 = smov (!%p1972_p3), 0  }
  0x4c   : > { %s3186_s3 = smov (!%p1972_p3), 0   ;;  %s3188_s28 = smov (!%p1972_p3), 0  }
  0x50 LB: >> { %v708_v1 = vld [vmem:[%s2929_s0] sm:$0xff]  ;;  %s710_s5 = sadd.s32 1, %s2933_s16  ;;  %s713_s6 = sadd.s32 1, %s2937_s3  ;;  %s2941_s28 = sphi %s3188_s28, %s701_s28   ;;  %s2937_s3 = sphi %s3186_s3, %s3697_s3   ;;  %s2933_s16 = sphi %s3184_s16, %s3696_s16   ;;  %s2929_s0 = sphi %s3695_s0, %s723_s0   ;;  %s2925_s26 = sphi %s3694_s26, %s724_s26  }
  0x51   : >> { %709 = vst [vmem:[%s2925_s26] sm:$0xff] %v708_v1  ;;  %p711_p4 = scmp.ge.s32.totalorder %s710_s5, %s3165_s4  ;;  %s701_s28 = sadd.s32 1, %s2941_s28  }
  0x52   : >> { %p700_p6 = scmp.ge.s32.totalorder %s701_s28, %s3169_s21 }
  0x53   : >> { %s3732_s5 = smov (%p711_p4, %s710_s5), 0  ;;  %s3734_s6 = smov (!%p711_p4, %s713_s6), %s2937_s3 }
  0x54   : >> { %p715_p5 = scmp.ge.s32.totalorder %s3734_s6, %s3722_s27  ;;  %s1973_s30 = sshll.u32 %s3732_s5, 3 }
  0x55   : >> { %s3696_s16 = smov %s3732_s5 }
  0x56   : >> { %s3736_s6 = smov (%p715_p5, %s3734_s6), 0  ;;  %703 = sbr.rel (!%p700_p6) target bundleno = 80 (0x50), region = 253 }
  0x57   : >> { %s717_s14 = smul.u32 20, %s3736_s6  ;;  %s1974_s13 = sshll.u32 %s3736_s6, 3 }
  0x58   : >> { %s722_s22 = sadd.s32 %s1974_s13, %s1973_s30  ;;  %s3697_s3 = smov %s3736_s6 }
  0x59   : >> { %s719_s10 = sadd.s32 %s1973_s30, %s717_s14  ;;  %s724_s26 = scalar_lea.vmem %s3175_s25, %s722_s22 [#allocation2]  }
  0x5a   : >> { %s723_s0 = scalar_lea.vmem %s3172_s23, %s719_s10  }
  0x5b PF: > { %s3007_s9 = smov 1   ;;  %p1977_p7 = scmp.le.s32.totalorder %s3158_s24, 0 }
  0x5c   : > { %s725_s13 = sshll.u32 %s3007_s9, %s3096_s20  ;;  %s3698_s10 = smov (!%p1977_p7), %s3155_s7 }
  0x5d   : > { %s3211_s14 = sadd.s32 4294967295, %s725_s13  ;;  %1838 = sbr.rel (%p1977_p7) target bundleno = 114 (0x72), region = 258 }
  0x5e   : > { %s3699_s22 = smov (!%p1977_p7), %s3152_s17  ;;  %s3220_s30 = smov (!%p1977_p7), 0  }
  0x5f   : > { %s3222_s5 = smov (!%p1977_p7), 0  }
  0x62 LB: >> { %v737_v2 = vld [vmem:[%s2949_s22] sm:%s3211_s14]  ;;  %v739_v3 = vld [vmem:[%s2949_s22 + $0x14] sm:%s3211_s14]  ;;  %s769_s9 = sadd.s32 1, %s2953_s30  ;;  %s731_s5 = sadd.s32 1, %s2957_s5   ;;  %s2957_s5 = sphi %s3222_s5, %s731_s5   ;;  %s2953_s30 = sphi %s3220_s30, %s3701_s30   ;;  %s2949_s22 = sphi %s3699_s22, %s774_s22   ;;  %s2945_s10 = sphi %s3698_s10, %s3700_s10  }
  0x63   : >> { %738 = vst [vmem:[%s2945_s10] sm:%s3211_s14] %v737_v2  ;;  %740 = vst [vmem:[%s2945_s10 + $0x8] sm:%s3211_s14] %v739_v3  ;;  %p770_p8 = scmp.ge.s32.totalorder %s769_s9, %s3158_s24  ;;  %p730_p9 = scmp.ge.s32.totalorder %s731_s5, %s3158_s24 }
  0x64   : >> { %v741_v4 = vld [vmem:[%s2949_s22 + $0x28] sm:%s3211_s14]  ;;  %v743_v5 = vld [vmem:[%s2949_s22 + $0x3c] sm:%s3211_s14] }
  0x65   : >> { %742 = vst [vmem:[%s2945_s10 + $0x10] sm:%s3211_s14] %v741_v4  ;;  %744 = vst [vmem:[%s2945_s10 + $0x18] sm:%s3211_s14] %v743_v5  ;;  %s3738_s9 = smov (%p770_p8, %s769_s9), 0 }
  0x66   : >> { %v745_v6 = vld [vmem:[%s2949_s22 + $0x50] sm:%s3211_s14]  ;;  %v747_v7 = vld [vmem:[%s2949_s22 + $0x64] sm:%s3211_s14]  ;;  %s772_s20 = smul.u32 320, %s3738_s9  ;;  %s1978_s3 = sshll.u32 %s3738_s9, 7 }
  0x67   : >> { %746 = vst [vmem:[%s2945_s10 + $0x20] sm:%s3211_s14] %v745_v6  ;;  %748 = vst [vmem:[%s2945_s10 + $0x28] sm:%s3211_s14] %v747_v7  ;;  %s775_s4 = scalar_lea.vmem %s3155_s7, %s1978_s3 [#allocation2]   ;;  %s3701_s30 = smov %s3738_s9 }
  0x68   : >> { %v749_v8 = vld [vmem:[%s2949_s22 + $0x78] sm:%s3211_s14]  ;;  %v751_v9 = vld [vmem:[%s2949_s22 + $0x8c] sm:%s3211_s14] }
  0x69   : >> { %750 = vst [vmem:[%s2945_s10 + $0x30] sm:%s3211_s14] %v749_v8  ;;  %752 = vst [vmem:[%s2945_s10 + $0x38] sm:%s3211_s14] %v751_v9 }
  0x6a   : >> { %v753_v10 = vld [vmem:[%s2949_s22 + $0xa0] sm:%s3211_s14]  ;;  %v755_v11 = vld [vmem:[%s2949_s22 + $0xb4] sm:%s3211_s14] }
  0x6b   : >> { %754 = vst [vmem:[%s2945_s10 + $0x40] sm:%s3211_s14] %v753_v10  ;;  %756 = vst [vmem:[%s2945_s10 + $0x48] sm:%s3211_s14] %v755_v11 }
  0x6c   : >> { %v757_v12 = vld [vmem:[%s2949_s22 + $0xc8] sm:%s3211_s14]  ;;  %v759_v13 = vld [vmem:[%s2949_s22 + $0xdc] sm:%s3211_s14] }
  0x6d   : >> { %758 = vst [vmem:[%s2945_s10 + $0x50] sm:%s3211_s14] %v757_v12  ;;  %760 = vst [vmem:[%s2945_s10 + $0x58] sm:%s3211_s14] %v759_v13  ;;  %733 = sbr.rel (!%p730_p9) target bundleno = 98 (0x62), region = 264 }
  0x6e   : >> { %v761_v14 = vld [vmem:[%s2949_s22 + $0xf0] sm:%s3211_s14]  ;;  %v763_v15 = vld [vmem:[%s2949_s22 + $0x104] sm:%s3211_s14] }
  0x6f   : >> { %762 = vst [vmem:[%s2945_s10 + $0x60] sm:%s3211_s14] %v761_v14  ;;  %764 = vst [vmem:[%s2945_s10 + $0x68] sm:%s3211_s14] %v763_v15 }
  0x70   : >> { %v765_v16 = vld [vmem:[%s2949_s22 + $0x118] sm:%s3211_s14]  ;;  %v767_v17 = vld [vmem:[%s2949_s22 + $0x12c] sm:%s3211_s14]  ;;  %s774_s22 = scalar_lea.vmem %s3152_s17, %s772_s20  }
  0x71   : >> { %766 = vst [vmem:[%s2945_s10 + $0x70] sm:%s3211_s14] %v765_v16  ;;  %768 = vst [vmem:[%s2945_s10 + $0x78] sm:%s3211_s14] %v767_v17  ;;  %s3700_s10 = smov %s775_s4 }
  0x72 PF: > { %s3702_s21 = smul.u32 320, %s3158_s24  ;;  %s3703_s25 = sshll.u32 %s3158_s24, 7 }
  0x73   : > { %s782_s26 = scalar_lea.vmem %s3155_s7, %s3703_s25 [#allocation2]   ;;  %p1982_p10 = scmp.le.s32.totalorder %s3161_s29, 0 }
  0x74   : > { %s780_s23 = scalar_lea.vmem %s3152_s17, %s3702_s21   ;;  %s2959_s0 = smov (!%p1982_p10), %s782_s26  }
  0x75   : > { %1852 = sbr.rel (%p1982_p10) target bundleno = 130 (0x82), region = 269  ;;  %s2963_s16 = smov (!%p1982_p10), %s780_s23  }
  0x76   : > { %s2967_s28 = smov (!%p1982_p10), 0   ;;  %s2971_s6 = smov (!%p1982_p10), 0  }
  0x7a LB: >> { %v792_v18 = vld [vmem:[%s2965_s16] sm:%s3211_s14]  ;;  %s794_s17 = sadd.s32 1, %s2969_s28  ;;  %s786_s6 = sadd.s32 1, %s2973_s6   ;;  %s2973_s6 = sphi %s2971_s6, %s786_s6   ;;  %s2969_s28 = sphi %s2967_s28, %s2968_s28   ;;  %s2965_s16 = sphi %s2963_s16, %s799_s16   ;;  %s2961_s0 = sphi %s2959_s0, %s800_s0  }
  0x7b   : >> { %793 = vst [vmem:[%s2961_s0] sm:%s3211_s14] %v792_v18  ;;  %p795_p11 = scmp.ge.s32.totalorder %s794_s17, %s3161_s29  ;;  %p785_p12 = scmp.ge.s32.totalorder %s786_s6, %s3161_s29 }
  0x7d   : >> { %s3740_s17 = smov (%p795_p11, %s794_s17), 0  ;;  %788 = sbr.rel (!%p785_p12) target bundleno = 122 (0x7a), region = 275 }
  0x7e   : >> { %s797_s7 = smul.u32 20, %s3740_s17  ;;  %s1983_s24 = sshll.u32 %s3740_s17, 3 }
  0x7f   : >> { %s800_s0 = scalar_lea.vmem %s782_s26, %s1983_s24 [#allocation2]   ;;  %s2968_s28 = smov %s3740_s17  }
  0x80   : >> { %s799_s16 = scalar_lea.vmem %s780_s23, %s797_s7  }
  0x82 PF: > { %p1984_p13 = scmp.ge.u32.totalorder %s3090_s18, 8 }
  0x83   : > { %s3324_s13 = sshrl.u32 (!%p1984_p13), %s3722_s27, 4  ;;  %s3008_s10 = smov (!%p1984_p13), 1  }
  0x84   : > { %151 = sbr.rel (%p1984_p13) target bundleno = 174 (0xae), region = 32  ;;  %s152_s22 = sshll.u32 (!%p1984_p13), %s3008_s10, %s3090_s18 }
  0x85   : > { %s3327_s30 = sadd.s32 (!%p1984_p13), 4294967295, %s152_s22  ;;  %p1986_p0 = scmp.le.s32.totalorder (!%p1984_p13), %s3324_s13, 0 }
  0x89   : > { %1866 = sbr.rel (%p1986_p0) target bundleno = 158 (0x9e), region = 280  ;;  %s3704_s29 = smov (!%p1986_p0), %s3092_s19 }
  0x8a   : > { %s3705_s14 = smov (!%p1986_p0), %s3088_s8  ;;  %s3336_s5 = smov (!%p1986_p0), 0  }
  0x8b   : > { %s3338_s9 = smov (!%p1986_p0), 0  }
  0x8e LB: >> { %v164_v19 = vld [vmem:[%s2981_s14] sm:%s3327_s30]  ;;  %v166_v20 = vld [vmem:[%s2981_s14 + $0x14] sm:%s3327_s30]  ;;  %s196_s18 = sadd.s32 1, %s2985_s5  ;;  %s158_s9 = sadd.s32 1, %s2989_s9   ;;  %s2989_s9 = sphi %s3338_s9, %s158_s9   ;;  %s2985_s5 = sphi %s3336_s5, %s3707_s5   ;;  %s2981_s14 = sphi %s3705_s14, %s201_s14   ;;  %s2977_s29 = sphi %s3704_s29, %s3706_s29  }
  0x8f   : >> { %165 = vst [vmem:[%s2977_s29] sm:%s3327_s30] %v164_v19  ;;  %167 = vst [vmem:[%s2977_s29 + $0x8] sm:%s3327_s30] %v166_v20  ;;  %p197_p1 = scmp.ge.s32.totalorder %s196_s18, %s3324_s13  ;;  %p157_p2 = scmp.ge.s32.totalorder %s158_s9, %s3324_s13 }
  0x90   : >> { %v168_v21 = vld [vmem:[%s2981_s14 + $0x28] sm:%s3327_s30]  ;;  %v170_v22 = vld [vmem:[%s2981_s14 + $0x3c] sm:%s3327_s30] }
  0x91   : >> { %169 = vst [vmem:[%s2977_s29 + $0x10] sm:%s3327_s30] %v168_v21  ;;  %171 = vst [vmem:[%s2977_s29 + $0x18] sm:%s3327_s30] %v170_v22  ;;  %s3742_s18 = smov (%p197_p1, %s196_s18), 0 }
  0x92   : >> { %v172_v23 = vld [vmem:[%s2981_s14 + $0x50] sm:%s3327_s30]  ;;  %v174_v24 = vld [vmem:[%s2981_s14 + $0x64] sm:%s3327_s30]  ;;  %s199_s20 = smul.u32 320, %s3742_s18  ;;  %s1987_s3 = sshll.u32 %s3742_s18, 7 }
  0x93   : >> { %173 = vst [vmem:[%s2977_s29 + $0x20] sm:%s3327_s30] %v172_v23  ;;  %175 = vst [vmem:[%s2977_s29 + $0x28] sm:%s3327_s30] %v174_v24  ;;  %s202_s4 = scalar_lea.vmem %s3092_s19, %s1987_s3 [#allocation2]   ;;  %s3707_s5 = smov %s3742_s18 }
  0x94   : >> { %v176_v25 = vld [vmem:[%s2981_s14 + $0x78] sm:%s3327_s30]  ;;  %v178_v26 = vld [vmem:[%s2981_s14 + $0x8c] sm:%s3327_s30] }
  0x95   : >> { %177 = vst [vmem:[%s2977_s29 + $0x30] sm:%s3327_s30] %v176_v25  ;;  %179 = vst [vmem:[%s2977_s29 + $0x38] sm:%s3327_s30] %v178_v26 }
  0x96   : >> { %v180_v27 = vld [vmem:[%s2981_s14 + $0xa0] sm:%s3327_s30]  ;;  %v182_v28 = vld [vmem:[%s2981_s14 + $0xb4] sm:%s3327_s30] }
  0x97   : >> { %181 = vst [vmem:[%s2977_s29 + $0x40] sm:%s3327_s30] %v180_v27  ;;  %183 = vst [vmem:[%s2977_s29 + $0x48] sm:%s3327_s30] %v182_v28 }
  0x98   : >> { %v184_v29 = vld [vmem:[%s2981_s14 + $0xc8] sm:%s3327_s30]  ;;  %v186_v30 = vld [vmem:[%s2981_s14 + $0xdc] sm:%s3327_s30] }
  0x99   : >> { %185 = vst [vmem:[%s2977_s29 + $0x50] sm:%s3327_s30] %v184_v29  ;;  %187 = vst [vmem:[%s2977_s29 + $0x58] sm:%s3327_s30] %v186_v30  ;;  %160 = sbr.rel (!%p157_p2) target bundleno = 142 (0x8e), region = 286 }
  0x9a   : >> { %v188_v31 = vld [vmem:[%s2981_s14 + $0xf0] sm:%s3327_s30]  ;;  %v190_v32 = vld [vmem:[%s2981_s14 + $0x104] sm:%s3327_s30] }
  0x9b   : >> { %189 = vst [vmem:[%s2977_s29 + $0x60] sm:%s3327_s30] %v188_v31  ;;  %191 = vst [vmem:[%s2977_s29 + $0x68] sm:%s3327_s30] %v190_v32 }
  0x9c   : >> { %v192_v33 = vld [vmem:[%s2981_s14 + $0x118] sm:%s3327_s30]  ;;  %v194_v34 = vld [vmem:[%s2981_s14 + $0x12c] sm:%s3327_s30]  ;;  %s201_s14 = scalar_lea.vmem %s3088_s8, %s199_s20  }
  0x9d   : >> { %193 = vst [vmem:[%s2977_s29 + $0x70] sm:%s3327_s30] %v192_v33  ;;  %195 = vst [vmem:[%s2977_s29 + $0x78] sm:%s3327_s30] %v194_v34  ;;  %s3706_s29 = smov %s202_s4 }
  0x9e PF: > { %s3428_s21 = sand.u32 15, %s3722_s27   ;;  %s1989_s23 = smul.u32 320, %s3324_s13 }
  0x9f   : > { %s2074_s25 = sshll.u32 %s3324_s13, 7  ;;  %p1991_p3 = scmp.le.s32.totalorder %s3428_s21, 0 }
  0xa0   : > { %s207_s26 = scalar_lea.vmem %s3088_s8, %s1989_s23   ;;  %s209_s0 = scalar_lea.vmem %s3092_s19, %s2074_s25 [#allocation2]  }
  0xa1   : > { %1880 = sbr.rel (%p1991_p3) target bundleno = 174 (0xae), region = 291  ;;  %s2991_s16 = smov (!%p1991_p3), %s209_s0  }
  0xa2   : > { %s2995_s28 = smov (!%p1991_p3), %s207_s26   ;;  %s2999_s6 = smov (!%p1991_p3), 0  }
  0xa3   : > { %s3003_s17 = smov (!%p1991_p3), 0  }
  0xa6 LB: >> { %v219_v35 = vld [vmem:[%s2997_s28] sm:%s3327_s30]  ;;  %s221_s27 = sadd.s32 1, %s3001_s6  ;;  %s213_s17 = sadd.s32 1, %s3005_s17   ;;  %s3005_s17 = sphi %s3003_s17, %s213_s17   ;;  %s3001_s6 = sphi %s2999_s6, %s3000_s6   ;;  %s2997_s28 = sphi %s2995_s28, %s226_s28   ;;  %s2993_s16 = sphi %s2991_s16, %s227_s16  }
  0xa7   : >> { %220 = vst [vmem:[%s2993_s16] sm:%s3327_s30] %v219_v35  ;;  %p222_p4 = scmp.ge.s32.totalorder %s221_s27, %s3428_s21  ;;  %p212_p5 = scmp.ge.s32.totalorder %s213_s17, %s3428_s21 }
  0xa9   : >> { %s3744_s27 = smov (%p222_p4, %s221_s27), 0  ;;  %215 = sbr.rel (!%p212_p5) target bundleno = 166 (0xa6), region = 297 }
  0xaa   : >> { %s224_s8 = smul.u32 20, %s3744_s27  ;;  %s1992_s19 = sshll.u32 %s3744_s27, 3 }
  0xab   : >> { %s227_s16 = scalar_lea.vmem %s209_s0, %s1992_s19 [#allocation2]   ;;  %s3000_s6 = smov %s3744_s27  }
  0xac   : >> { %s226_s28 = scalar_lea.vmem %s207_s26, %s224_s8  }
  0xae PF: > { %p1993_p6 = scmp.ge.s32.totalorder %s2901_s15, 1  ;;  %p812_p7 = scmp.lt.s32.totalorder %s2901_s15, 10 }
  0xb0   : > { %p813_p8 = pnand %p1993_p6, %p812_p7 }
  0xb1   : > { %s1995_s7 = sshll.u32 (!%p813_p8), %s2885_s11, 6  ;;  %p861_p9 = scmp.lt.s32.totalorder (!%p813_p8), %s2889_s12, 2 }
  0xb2   : > { %816 = sbr.rel (%p813_p8) target bundleno = 506 (0x1fa), region = 118  ;;  %p856_p10 = scmp.lt.s32.totalorder (!%p813_p8), %s1995_s7, 191 }
  0xb3   : > { %p2063_p11 = scmp.ne.s32.totalorder (!%p813_p8), %s2885_s11, 0 }
  0xb7   : > { %s3746_s12 = smov (!%p861_p9, %s2889_s12), 2  ;;  %s3748_s7 = smov (!%p856_p10, %s1995_s7), 191 }
  0xb8   : > { %s2075_s24 = sshll.u32 %s3746_s12, 7  ;;  %s1996_s13 = sshll.u32 %s3748_s7, 2 }
  0xb9   : > { %s3447_s30 = scalar_lea.vmem %s3674_s2, %s2075_s24  ;;  %s3452_s5 = scalar_lea.vmem %s3673_s1, %s1996_s13 }
  0xba   : > { %v2631_v36 = vld [vmem:[%s3452_s5 + $0x78] sm:$0xff]   ;;  %v2635_v40 = vld [vmem:[%s3452_s5 + $0x70] sm:$0xff]   ;;  %v2639_v44 = vld [vmem:[%s3452_s5 + $0x68] sm:$0xff]   ;;  %s3708_s12 = sld [smem:[#allocation3_spill]] }
  0xbb   : > { %v2632_v37 = vld [vmem:[%s3452_s5 + $0xf8] sm:$0xff]   ;;  %2076 = vmatprep.subr.bf16.mxu0 %v2631_v36  ;;  %v2636_v41 = vld [vmem:[%s3452_s5 + $0xf0] sm:$0xff]   ;;  %v2640_v45 = vld [vmem:[%s3452_s5 + $0xe8] sm:$0xff]  }
  0xbc   : > { %v2633_v38 = vld [vmem:[%s3452_s5 + $0x38] sm:$0xff]   ;;  %2140 = vmatprep.subr.bf16.mxu1 %v2632_v37  ;;  %v2637_v42 = vld [vmem:[%s3452_s5 + $0x30] sm:$0xff]   ;;  %v2641_v46 = vld [vmem:[%s3452_s5 + $0x28] sm:$0xff]  }
  0xbd   : > { %v2634_v39 = vld [vmem:[%s3452_s5 + $0xb8] sm:$0xff]   ;;  %2077 = vmatpush3.bf16.msra.mxu0 %v2633_v38  ;;  %v2638_v43 = vld [vmem:[%s3452_s5 + $0xb0] sm:$0xff]   ;;  %v2642_v47 = vld [vmem:[%s3452_s5 + $0xa8] sm:$0xff]  }
  0xbe   : > { %2141 = vmatpush3.bf16.msra.mxu1 %v2634_v39  ;;  %2078 = vmatprep.subr.bf16.mxu0 %v2635_v40  ;;  %v2643_v48 = vld [vmem:[%s3452_s5 + $0x60] sm:$0xff]   ;;  %v2647_v52 = vld [vmem:[%s3452_s5 + $0x58] sm:$0xff]   ;;  %v2651_v56 = vld [vmem:[%s3452_s5 + $0x50] sm:$0xff]  }
  0xbf   : > { %2142 = vmatprep.subr.bf16.mxu1 %v2636_v41  ;;  %v2644_v49 = vld [vmem:[%s3452_s5 + $0xe0] sm:$0xff]   ;;  %v2648_v53 = vld [vmem:[%s3452_s5 + $0xd8] sm:$0xff]   ;;  %v2652_v57 = vld [vmem:[%s3452_s5 + $0xd0] sm:$0xff]  }
  0xc0   : > { %v2645_v50 = vld [vmem:[%s3452_s5 + $0x20] sm:$0xff]   ;;  %v2649_v54 = vld [vmem:[%s3452_s5 + $0x18] sm:$0xff]   ;;  %v2653_v58 = vld [vmem:[%s3452_s5 + $0x10] sm:$0xff]   ;;  %s819_s9 = sand.u32 1, %s3708_s12  }
  0xc1   : > { %2079 = vmatpush3.bf16.msra.mxu0 %v2637_v42  ;;  %v2646_v51 = vld [vmem:[%s3452_s5 + $0xa0] sm:$0xff]   ;;  %v2650_v55 = vld [vmem:[%s3452_s5 + $0x98] sm:$0xff]   ;;  %v2654_v59 = vld [vmem:[%s3452_s5 + $0x90] sm:$0xff]   ;;  %s1994_s18 = sshll.u32 %s819_s9, 7 }
  0xc2   : > { %2143 = vmatpush3.bf16.msra.mxu1 %v2638_v43  ;;  %2080 = vmatprep.subr.bf16.mxu0 %v2639_v44  ;;  %v2655_v60 = vld [vmem:[%s3452_s5 + $0x48] sm:$0xff]   ;;  %v2659_v0 = vld [vmem:[%s3452_s5 + $0x40] sm:$0xff]   ;;  %s3487_s20 = scalar_lea.vmem [#allocation2], %s1994_s18 }
  0xc3   : > { %2144 = vmatprep.subr.bf16.mxu1 %v2640_v45  ;;  %v2656_v61 = vld [vmem:[%s3452_s5 + $0xc8] sm:$0xff]   ;;  %v2660_v1 = vld [vmem:[%s3452_s5 + $0xc0] sm:$0xff]   ;;  %v869_v6 = vld [vmem:[%s3487_s20 + $0x10] sm:$0xff] }
  0xc4   : > { %v2657_v62 = vld [vmem:[%s3452_s5 + $0x8] sm:$0xff]   ;;  %v2661_v2 = vld [vmem:[%s3452_s5] sm:$0xff]   ;;  %v870_v11 = vld [vmem:[%s3487_s20 + $0x18] sm:$0xff]  ;;  %v887_v12 = vunpack.c.l.s8.bf16 %v869_v6  ;;  %v888_v14 = vunpack.c.h.s8.bf16 %v869_v6 }
  0xc5   : > { %2081 = vmatpush3.bf16.msra.mxu0 %v2641_v46  ;;  %v2658_v63 = vld [vmem:[%s3452_s5 + $0x88] sm:$0xff]   ;;  %v2662_v3 = vld [vmem:[%s3452_s5 + $0x80] sm:$0xff]   ;;  %v889_v13 = vunpack.c.l.s8.bf16 %v870_v11  ;;  %v890_v15 = vunpack.c.h.s8.bf16 %v870_v11  ;;  %v873_v32 = vld [vmem:[%s3487_s20 + $0x30] sm:$0xff] }
  0xc6   : > { %2145 = vmatpush3.bf16.msra.mxu1 %v2642_v47  ;;  %2082 = vmatprep.subr.bf16.mxu0 %v2643_v48  ;;  %v867_v4 = vld [vmem:[%s3487_s20] sm:$0xff]  ;;  %v868_v5 = vld [vmem:[%s3487_s20 + $0x8] sm:$0xff]  ;;  %v874_v33 = vld [vmem:[%s3487_s20 + $0x38] sm:$0xff]  ;;  %v895_v34 = vunpack.c.l.s8.bf16 %v873_v32  ;;  %v896_v36 = vunpack.c.h.s8.bf16 %v873_v32 }
  0xc7   : > { %2146 = vmatprep.subr.bf16.mxu1 %v2644_v49  ;;  %v883_v7 = vunpack.c.l.s8.bf16 %v867_v4  ;;  %v885_v8 = vunpack.c.l.s8.bf16 %v868_v5  ;;  %v884_v9 = vunpack.c.h.s8.bf16 %v867_v4  ;;  %v886_v10 = vunpack.c.h.s8.bf16 %v868_v5  ;;  %v871_v22 = vld [vmem:[%s3487_s20 + $0x20] sm:$0xff]  ;;  %v872_v23 = vld [vmem:[%s3487_s20 + $0x28] sm:$0xff] }
  0xc8   : > { %v2004_v20 = vcombine.high %v887_v12, %v889_v13  ;;  %v2006_v21 = vcombine.high %v888_v14, %v890_v15  ;;  %v891_v24 = vunpack.c.l.s8.bf16 %v871_v22  ;;  %v893_v25 = vunpack.c.l.s8.bf16 %v872_v23  ;;  %v875_v42 = vld [vmem:[%s3487_s20 + $0x40] sm:$0xff]  ;;  %v876_v43 = vld [vmem:[%s3487_s20 + $0x48] sm:$0xff] }
  0xc9   : > { %2083 = vmatpush3.bf16.msra.mxu0 %v2645_v50  ;;  %v2000_v16 = vcombine.high %v883_v7, %v885_v8  ;;  %v2002_v17 = vcombine.high %v884_v9, %v886_v10  ;;  %v1999_v18 = vcombine.low %v883_v7, %v885_v8  ;;  %v2001_v19 = vcombine.low %v884_v9, %v886_v10  ;;  %v881_v8 = vld [vmem:[%s3487_s20 + $0x70] sm:$0xff]  ;;  %v882_v9 = vld [vmem:[%s3487_s20 + $0x78] sm:$0xff] }
  0xca   : > { %2147 = vmatpush3.bf16.msra.mxu1 %v2646_v51  ;;  %2084 = vmatprep.subr.bf16.mxu0 %v2647_v52  ;;  %v892_v26 = vunpack.c.h.s8.bf16 %v871_v22  ;;  %v894_v27 = vunpack.c.h.s8.bf16 %v872_v23  ;;  %v2003_v28 = vcombine.low %v887_v12, %v889_v13  ;;  %v2005_v29 = vcombine.low %v888_v14, %v890_v15  ;;  %v877_v52 = vld [vmem:[%s3487_s20 + $0x50] sm:$0xff] }
  0xcb   : > { %2148 = vmatprep.subr.bf16.mxu1 %v2648_v53  ;;  %1363 = vmatprep.mubr.bf16.mxu0 %v2000_v16  ;;  %v2008_v30 = vcombine.high %v891_v24, %v893_v25  ;;  %v897_v35 = vunpack.c.l.s8.bf16 %v874_v33  ;;  %v898_v37 = vunpack.c.h.s8.bf16 %v874_v33  ;;  %v2007_v38 = vcombine.low %v891_v24, %v893_v25  ;;  %v878_v53 = vld [vmem:[%s3487_s20 + $0x58] sm:$0xff] }
  0xcc   : > { %1460 = vmatprep.mubr.bf16.mxu1 %v2002_v17  ;;  %v2010_v31 = vcombine.high %v892_v26, %v894_v27  ;;  %v2009_v39 = vcombine.low %v892_v26, %v894_v27  ;;  %v899_v44 = vunpack.c.l.s8.bf16 %v875_v42  ;;  %v901_v45 = vunpack.c.l.s8.bf16 %v876_v43 }
  0xcd   : > { %2085 = vmatpush3.bf16.msra.mxu0 %v2649_v54  ;;  %v2012_v40 = vcombine.high %v895_v34, %v897_v35  ;;  %v2014_v41 = vcombine.high %v896_v36, %v898_v37  ;;  %v900_v46 = vunpack.c.h.s8.bf16 %v875_v42  ;;  %v902_v47 = vunpack.c.h.s8.bf16 %v876_v43 }
  0xce   : > { %2149 = vmatpush3.bf16.msra.mxu1 %v2650_v55  ;;  %2086 = vmatprep.subr.bf16.mxu0 %v2651_v56  ;;  %v2011_v48 = vcombine.low %v895_v34, %v897_v35  ;;  %v2013_v49 = vcombine.low %v896_v36, %v898_v37  ;;  %v2016_v50 = vcombine.high %v899_v44, %v901_v45  ;;  %v903_v54 = vunpack.c.l.s8.bf16 %v877_v52 }
  0xcf   : > { %2150 = vmatprep.subr.bf16.mxu1 %v2652_v57  ;;  %v2018_v51 = vcombine.high %v900_v46, %v902_v47  ;;  %v905_v55 = vunpack.c.l.s8.bf16 %v878_v53  ;;  %v904_v56 = vunpack.c.h.s8.bf16 %v877_v52  ;;  %v906_v57 = vunpack.c.h.s8.bf16 %v878_v53 }
  0xd0   : > { %v911_v10 = vunpack.c.l.s8.bf16 %v881_v8  ;;  %v913_v11 = vunpack.c.l.s8.bf16 %v882_v9  ;;  %v912_v12 = vunpack.c.h.s8.bf16 %v881_v8  ;;  %v914_v13 = vunpack.c.h.s8.bf16 %v882_v9 }
  0xd1   : > { %2087 = vmatpush3.bf16.msra.mxu0 %v2653_v58  ;;  %v2015_v58 = vcombine.low %v899_v44, %v901_v45  ;;  %v2019_v4 = vcombine.low %v903_v54, %v905_v55  ;;  %v2021_v5 = vcombine.low %v904_v56, %v906_v57 }
  0xd2   : > { %2151 = vmatpush3.bf16.msra.mxu1 %v2654_v59  ;;  %2088 = vmatprep.subr.bf16.mxu0 %v2655_v60  ;;  %v2017_v59 = vcombine.low %v900_v46, %v902_v47  ;;  %v2020_v60 = vcombine.high %v903_v54, %v905_v55  ;;  %v2028_v16 = vcombine.high %v911_v10, %v913_v11 }
  0xd3   : > { %2152 = vmatprep.subr.bf16.mxu1 %v2656_v61  ;;  %v2022_v61 = vcombine.high %v904_v56, %v906_v57  ;;  %v2030_v17 = vcombine.high %v912_v12, %v914_v13 }
  0xd5   : > { %2089 = vmatpush3.bf16.msra.mxu0 %v2657_v62  ;;  %v879_v62 = vld [vmem:[%s3487_s20 + $0x60] sm:$0xff] }
  0xd6   : > { %2153 = vmatpush3.bf16.msra.mxu1 %v2658_v63  ;;  %2090 = vmatprep.subr.bf16.mxu0 %v2659_v0  ;;  %v880_v63 = vld [vmem:[%s3487_s20 + $0x68] sm:$0xff]  ;;  %v907_v0 = vunpack.c.l.s8.bf16 %v879_v62 }
  0xd7   : > { %2154 = vmatprep.subr.bf16.mxu1 %v2660_v1  ;;  %v909_v1 = vunpack.c.l.s8.bf16 %v880_v63 }
  0xd9   : > { %2091 = vmatpush3.bf16.msra.mxu0 %v2661_v2  ;;  %v908_v2 = vunpack.c.h.s8.bf16 %v879_v62  ;;  %v2024_v6 = vcombine.high %v907_v0, %v909_v1  ;;  %v2023_v14 = vcombine.low %v907_v0, %v909_v1 }
  0xda   : > { %2155 = vmatpush3.bf16.msra.mxu1 %v2662_v3  ;;  %v910_v3 = vunpack.c.h.s8.bf16 %v880_v63 }
  0xdc   : > { %1364 = vmatmul.mubr.bf16.vlgmr.msra.gmra.mxu0 %v1999_v18  ;;  %v2026_v7 = vcombine.high %v908_v2, %v910_v3  ;;  %v2025_v15 = vcombine.low %v908_v2, %v910_v3  ;;  %v2027_v18 = vcombine.low %v911_v10, %v913_v11 }
  0xdd   : > { %1461 = vmatmul.mubr.bf16.vlgmr.msra.gmra.mxu1 %v2001_v19  ;;  %1371 = vmatprep.mubr.bf16.mxu0 %v2004_v20  ;;  %v2029_v19 = vcombine.low %v912_v12, %v914_v13 }
  0xde   : > { %1468 = vmatprep.mubr.bf16.mxu1 %v2006_v21 }
  0xe4   : > { %1372 = vmatmul.mubr.bf16.gmra.mxu0 %v2003_v28 }
  0xe5   : > { %1469 = vmatmul.mubr.bf16.gmra.mxu1 %v2005_v29  ;;  %1379 = vmatprep.mubr.bf16.mxu0 %v2008_v30 }
  0xe6   : > { %1476 = vmatprep.mubr.bf16.mxu1 %v2010_v31 }
  0xec   : > { %1380 = vmatmul.mubr.bf16.gmra.mxu0 %v2007_v38 }
  0xed   : > { %1477 = vmatmul.mubr.bf16.gmra.mxu1 %v2009_v39  ;;  %1387 = vmatprep.mubr.bf16.mxu0 %v2012_v40 }
  0xee   : > { %1484 = vmatprep.mubr.bf16.mxu1 %v2014_v41 }
  0xf4   : > { %1388 = vmatmul.mubr.bf16.gmra.mxu0 %v2011_v48 }
  0xf5   : > { %1485 = vmatmul.mubr.bf16.gmra.mxu1 %v2013_v49  ;;  %1395 = vmatprep.mubr.bf16.mxu0 %v2016_v50 }
  0xf6   : > { %1492 = vmatprep.mubr.bf16.mxu1 %v2018_v51 }
  0xfc   : > { %1396 = vmatmul.mubr.bf16.gmra.mxu0 %v2015_v58 }
  0xfd   : > { %1493 = vmatmul.mubr.bf16.gmra.mxu1 %v2017_v59  ;;  %1403 = vmatprep.mubr.bf16.mxu0 %v2020_v60 }
  0xfe   : > { %1500 = vmatprep.mubr.bf16.mxu1 %v2022_v61 }
 0x104   : > { %1404 = vmatmul.mubr.bf16.gmra.mxu0 %v2019_v4 }
 0x105   : > { %1501 = vmatmul.mubr.bf16.gmra.mxu1 %v2021_v5  ;;  %1411 = vmatprep.mubr.bf16.mxu0 %v2024_v6 }
 0x106   : > { %1508 = vmatprep.mubr.bf16.mxu1 %v2026_v7 }
 0x10c   : > { %1412 = vmatmul.mubr.bf16.gmra.mxu0 %v2023_v14 }
 0x10d   : > { %1509 = vmatmul.mubr.bf16.gmra.mxu1 %v2025_v15  ;;  %1419 = vmatprep.mubr.bf16.mxu0 %v2028_v16 }
 0x10e   : > { %1516 = vmatprep.mubr.bf16.mxu1 %v2030_v17 }
 0x114   : > { %1420 = vmatmul.mubr.bf16.gmra.mxu0 %v2027_v18 }
 0x115   : > { %1517 = vmatmul.mubr.bf16.gmra.mxu1 %v2029_v19 }
 0x19c   : > { %v2092_v20 = vpop.f32.mrf.mxu0 }
 0x19d   : > { %v2156_v21 = vpop.f32.mrf.mxu1 }
 0x19e   : > { %v2093_v22 = vpop.f32.mrf.mxu0 }
 0x19f   : > { %v2157_v23 = vpop.f32.mrf.mxu1  ;;  %v2094_v24 = vadd.f32 %v2093_v22, %v2092_v20 }
 0x1a0   : > { %v2158_v25 = vadd.f32 %v2157_v23, %v2156_v21  ;;  %v2095_v26 = vpop.f32.mrf.mxu0 }
 0x1a1   : > { %v2159_v27 = vpop.f32.mrf.mxu1 }
 0x1a2   : > { %v3505_v28 = vadd.f32 %v2158_v25, %v2094_v24  ;;  %v2096_v29 = vpop.f32.mrf.mxu0 }
 0x1a3   : > { %v2160_v30 = vpop.f32.mrf.mxu1  ;;  %v2097_v31 = vadd.f32 %v2096_v29, %v2095_v26 }
 0x1a4   : > { %v2161_v32 = vadd.f32 %v2160_v30, %v2159_v27  ;;  %v2098_v33 = vpop.f32.mrf.mxu0 }
 0x1a5   : > { %v2162_v34 = vpop.f32.mrf.mxu1 }
 0x1a6   : > { %v3507_v35 = vadd.f32 %v2161_v32, %v2097_v31  ;;  %v2099_v36 = vpop.f32.mrf.mxu0 }
 0x1a7   : > { %v2163_v37 = vpop.f32.mrf.mxu1  ;;  %v2100_v38 = vadd.f32 %v2099_v36, %v2098_v33 }
 0x1a8   : > { %v2164_v39 = vadd.f32 %v2163_v37, %v2162_v34  ;;  %v2101_v40 = vpop.f32.mrf.mxu0 }
 0x1a9   : > { %v2165_v41 = vpop.f32.mrf.mxu1 }
 0x1aa   : > { %v3509_v42 = vadd.f32 %v2164_v39, %v2100_v38  ;;  %v2102_v43 = vpop.f32.mrf.mxu0 }
 0x1ab   : > { %v2166_v44 = vpop.f32.mrf.mxu1  ;;  %v2103_v45 = vadd.f32 %v2102_v43, %v2101_v40 }
 0x1ac   : > { %v2167_v46 = vadd.f32 %v2166_v44, %v2165_v41  ;;  %v2104_v47 = vpop.f32.mrf.mxu0 }
 0x1ad   : > { %v2168_v48 = vpop.f32.mrf.mxu1 }
 0x1ae   : > { %v3511_v49 = vadd.f32 %v2167_v46, %v2103_v45  ;;  %v2105_v50 = vpop.f32.mrf.mxu0 }
 0x1af   : > { %v2169_v51 = vpop.f32.mrf.mxu1  ;;  %v2106_v52 = vadd.f32 %v2105_v50, %v2104_v47 }
 0x1b0   : > { %v2170_v53 = vadd.f32 %v2169_v51, %v2168_v48  ;;  %v2107_v54 = vpop.f32.mrf.mxu0 }
 0x1b1   : > { %v2171_v55 = vpop.f32.mrf.mxu1 }
 0x1b2   : > { %v3513_v56 = vadd.f32 %v2170_v53, %v2106_v52  ;;  %v2108_v57 = vpop.f32.mrf.mxu0 }
 0x1b3   : > { %v2172_v58 = vpop.f32.mrf.mxu1  ;;  %v2109_v59 = vadd.f32 %v2108_v57, %v2107_v54 }
 0x1b4   : > { %v2173_v60 = vadd.f32 %v2172_v58, %v2171_v55  ;;  %v2110_v61 = vpop.f32.mrf.mxu0 }
 0x1b5   : > { %v2174_v62 = vpop.f32.mrf.mxu1 }
 0x1b6   : > { %v3515_v63 = vadd.f32 %v2173_v60, %v2109_v59  ;;  %v2111_v0 = vpop.f32.mrf.mxu0 }
 0x1b7   : > { %v2175_v1 = vpop.f32.mrf.mxu1  ;;  %v2112_v2 = vadd.f32 %v2111_v0, %v2110_v61 }
 0x1b8   : > { %v2176_v3 = vadd.f32 %v2175_v1, %v2174_v62  ;;  %v2113_v4 = vpop.f32.mrf.mxu0 }
 0x1b9   : > { %v2177_v5 = vpop.f32.mrf.mxu1 }
 0x1ba   : > { %v3517_v6 = vadd.f32 %v2176_v3, %v2112_v2  ;;  %v2114_v7 = vpop.f32.mrf.mxu0 }
 0x1bb   : > { %v2178_v8 = vpop.f32.mrf.mxu1  ;;  %v2115_v9 = vadd.f32 %v2114_v7, %v2113_v4 }
 0x1bc   : > { %v2179_v10 = vadd.f32 %v2178_v8, %v2177_v5  ;;  %v2116_v11 = vpop.f32.mrf.mxu0 }
 0x1bd   : > { %v2180_v12 = vpop.f32.mrf.mxu1 }
 0x1be   : > { %v3519_v13 = vadd.f32 %v2179_v10, %v2115_v9  ;;  %v2117_v14 = vpop.f32.mrf.mxu0 }
 0x1bf   : > { %v2181_v15 = vpop.f32.mrf.mxu1  ;;  %v2118_v16 = vadd.f32 %v2117_v14, %v2116_v11 }
 0x1c0   : > { %v2182_v17 = vadd.f32 %v2181_v15, %v2180_v12  ;;  %v2119_v18 = vpop.f32.mrf.mxu0 }
 0x1c1   : > { %v2183_v19 = vpop.f32.mrf.mxu1 }
 0x1c2   : > { %v3521_v20 = vadd.f32 %v2182_v17, %v2118_v16  ;;  %v2120_v21 = vpop.f32.mrf.mxu0 }
 0x1c3   : > { %v2184_v22 = vpop.f32.mrf.mxu1  ;;  %v2121_v23 = vadd.f32 %v2120_v21, %v2119_v18 }
 0x1c4   : > { %v2185_v24 = vadd.f32 %v2184_v22, %v2183_v19  ;;  %v2122_v25 = vpop.f32.mrf.mxu0 }
 0x1c5   : > { %v2186_v26 = vpop.f32.mrf.mxu1 }
 0x1c6   : > { %v3523_v27 = vadd.f32 %v2185_v24, %v2121_v23  ;;  %v2123_v29 = vpop.f32.mrf.mxu0 }
 0x1c7   : > { %v2187_v30 = vpop.f32.mrf.mxu1  ;;  %v2124_v31 = vadd.f32 %v2123_v29, %v2122_v25 }
 0x1c8   : > { %v2188_v32 = vadd.f32 %v2187_v30, %v2186_v26  ;;  %v2125_v33 = vpop.f32.mrf.mxu0 }
 0x1c9   : > { %v2189_v34 = vpop.f32.mrf.mxu1 }
 0x1ca   : > { %v3525_v36 = vadd.f32 %v2188_v32, %v2124_v31  ;;  %v2126_v37 = vpop.f32.mrf.mxu0 }
 0x1cb   : > { %v2190_v38 = vpop.f32.mrf.mxu1  ;;  %v2127_v39 = vadd.f32 %v2126_v37, %v2125_v33 }
 0x1cc   : > { %v2191_v40 = vadd.f32 %v2190_v38, %v2189_v34  ;;  %v2128_v41 = vpop.f32.mrf.mxu0 }
 0x1cd   : > { %v2192_v43 = vpop.f32.mrf.mxu1 }
 0x1ce   : > { %v3527_v44 = vadd.f32 %v2191_v40, %v2127_v39  ;;  %v2129_v45 = vpop.f32.mrf.mxu0 }
 0x1cf   : > { %v2193_v46 = vpop.f32.mrf.mxu1  ;;  %v2130_v47 = vadd.f32 %v2129_v45, %v2128_v41 }
 0x1d0   : > { %v2194_v48 = vadd.f32 %v2193_v46, %v2192_v43  ;;  %v2131_v50 = vpop.f32.mrf.mxu0 }
 0x1d1   : > { %v2195_v51 = vpop.f32.mrf.mxu1 }
 0x1d2   : > { %v3529_v52 = vadd.f32 %v2194_v48, %v2130_v47  ;;  %v2132_v53 = vpop.f32.mrf.mxu0 }
 0x1d3   : > { %v2196_v54 = vpop.f32.mrf.mxu1  ;;  %v2133_v55 = vadd.f32 %v2132_v53, %v2131_v50 }
 0x1d4   : > { %v2197_v57 = vadd.f32 %v2196_v54, %v2195_v51  ;;  %v2134_v58 = vpop.f32.mrf.mxu0 }
 0x1d5   : > { %v2198_v59 = vpop.f32.mrf.mxu1 }
 0x1d6   : > { %v3531_v60 = vadd.f32 %v2197_v57, %v2133_v55  ;;  %v2135_v61 = vpop.f32.mrf.mxu0 }
 0x1d7   : > { %v2199_v62 = vpop.f32.mrf.mxu1  ;;  %v2136_v0 = vadd.f32 %v2135_v61, %v2134_v58 }
 0x1d8   : > { %v2200_v1 = vadd.f32 %v2199_v62, %v2198_v59  ;;  %v2137_v2 = vpop.f32.mrf.mxu0 }
 0x1d9   : > { %v2201_v3 = vpop.f32.mrf.mxu1 }
 0x1da   : > { %v3533_v4 = vadd.f32 %v2200_v1, %v2136_v0  ;;  %v2138_v5 = vpop.f32.mrf.mxu0  ;;  %1528 = sbr.rel (%p2063_p11) target bundleno = 488 (0x1e8), region = 126 }
 0x1db   : > { %v2202_v7 = vpop.f32.mrf.mxu1  ;;  %v2139_v8 = vadd.f32 %v2138_v5, %v2137_v2 }
 0x1dc   : > { %v2203_v9 = vadd.f32 %v2202_v7, %v2201_v3 }
 0x1de   : > { %v3535_v10 = vadd.f32 %v2203_v9, %v2139_v8 }
 0x1df   : > { %vm1529_vm0 = vcmask 261120  }
 0x1e0   : > { %1530 = vst.msk [vmem:[%s3447_s30] sm:$0xff] %vm1529_vm0, %v3505_v28  ;;  %1531 = vst.msk [vmem:[%s3447_s30 + $0x8] sm:$0xff] %vm1529_vm0, %v3507_v35 }
 0x1e1   : > { %1532 = vst.msk [vmem:[%s3447_s30 + $0x10] sm:$0xff] %vm1529_vm0, %v3509_v42  ;;  %1533 = vst.msk [vmem:[%s3447_s30 + $0x18] sm:$0xff] %vm1529_vm0, %v3511_v49 }
 0x1e2   : > { %1534 = vst.msk [vmem:[%s3447_s30 + $0x20] sm:$0xff] %vm1529_vm0, %v3513_v56  ;;  %1535 = vst.msk [vmem:[%s3447_s30 + $0x28] sm:$0xff] %vm1529_vm0, %v3515_v63 }
 0x1e3   : > { %1536 = vst.msk [vmem:[%s3447_s30 + $0x30] sm:$0xff] %vm1529_vm0, %v3517_v6  ;;  %1537 = vst.msk [vmem:[%s3447_s30 + $0x38] sm:$0xff] %vm1529_vm0, %v3519_v13 }
 0x1e4   : > { %1538 = vst.msk [vmem:[%s3447_s30 + $0x40] sm:$0xff] %vm1529_vm0, %v3521_v20  ;;  %1539 = vst.msk [vmem:[%s3447_s30 + $0x48] sm:$0xff] %vm1529_vm0, %v3523_v27 }
 0x1e5   : > { %1540 = vst.msk [vmem:[%s3447_s30 + $0x50] sm:$0xff] %vm1529_vm0, %v3525_v36  ;;  %1541 = vst.msk [vmem:[%s3447_s30 + $0x58] sm:$0xff] %vm1529_vm0, %v3527_v44 }
 0x1e6   : > { %1542 = vst.msk [vmem:[%s3447_s30 + $0x60] sm:$0xff] %vm1529_vm0, %v3529_v52  ;;  %1543 = vst.msk [vmem:[%s3447_s30 + $0x68] sm:$0xff] %vm1529_vm0, %v3531_v60 }
 0x1e7   : > { %1544 = vst.msk [vmem:[%s3447_s30 + $0x70] sm:$0xff] %vm1529_vm0, %v3533_v4  ;;  %1545 = vst.msk [vmem:[%s3447_s30 + $0x78] sm:$0xff] %vm1529_vm0, %v3535_v10 }
 0x1e8 PF: > { %p2064_p12 = scmp.le.s32.totalorder %s2885_s11, 0 }
 0x1ea   : > { %1549 = sbr.rel (%p2064_p12) target bundleno = 506 (0x1fa), region = 130 }
 0x1ef   : > { %v1550_v11 = vld [vmem:[%s3447_s30] sm:$0xff]  ;;  %vm1582_vm1 = vcmask 261120   ;;  %v1551_v12 = vld [vmem:[%s3447_s30 + $0x8] sm:$0xff]  ;;  %v1552_v14 = vld [vmem:[%s3447_s30 + $0x10] sm:$0xff] }
 0x1f0   : > { %v1566_v15 = vadd.f32 %v1550_v11, %v3505_v28  ;;  %v1567_v16 = vadd.f32 %v1551_v12, %v3507_v35  ;;  %v1568_v17 = vadd.f32 %v1552_v14, %v3509_v42  ;;  %v1553_v18 = vld [vmem:[%s3447_s30 + $0x18] sm:$0xff]  ;;  %v1554_v19 = vld [vmem:[%s3447_s30 + $0x20] sm:$0xff]  ;;  %v1555_v21 = vld [vmem:[%s3447_s30 + $0x28] sm:$0xff] }
 0x1f1   : > { %v1569_v22 = vadd.f32 %v1553_v18, %v3511_v49  ;;  %v1570_v23 = vadd.f32 %v1554_v19, %v3513_v56  ;;  %v1571_v24 = vadd.f32 %v1555_v21, %v3515_v63  ;;  %v1556_v28 = vld [vmem:[%s3447_s30 + $0x30] sm:$0xff]  ;;  %v1557_v25 = vld [vmem:[%s3447_s30 + $0x38] sm:$0xff]  ;;  %v1558_v35 = vld [vmem:[%s3447_s30 + $0x40] sm:$0xff] }
 0x1f2   : > { %1583 = vst.msk [vmem:[%s3447_s30] sm:$0xff] %vm1582_vm1, %v1566_v15  ;;  %1584 = vst.msk [vmem:[%s3447_s30 + $0x8] sm:$0xff] %vm1582_vm1, %v1567_v16  ;;  %v1572_v42 = vadd.f32 %v1556_v28, %v3517_v6  ;;  %v1573_v49 = vadd.f32 %v1557_v25, %v3519_v13  ;;  %v1574_v56 = vadd.f32 %v1558_v35, %v3521_v20  ;;  %v1559_v63 = vld [vmem:[%s3447_s30 + $0x48] sm:$0xff]  ;;  %v1560_v26 = vld [vmem:[%s3447_s30 + $0x50] sm:$0xff] }
 0x1f3   : > { %1585 = vst.msk [vmem:[%s3447_s30 + $0x10] sm:$0xff] %vm1582_vm1, %v1568_v17  ;;  %v1561_v29 = vld [vmem:[%s3447_s30 + $0x58] sm:$0xff]  ;;  %1586 = vst.msk [vmem:[%s3447_s30 + $0x18] sm:$0xff] %vm1582_vm1, %v1569_v22  ;;  %v1575_v6 = vadd.f32 %v1559_v63, %v3523_v27  ;;  %v1576_v13 = vadd.f32 %v1560_v26, %v3525_v36  ;;  %v1562_v30 = vld [vmem:[%s3447_s30 + $0x60] sm:$0xff] }
 0x1f4   : > { %1587 = vst.msk [vmem:[%s3447_s30 + $0x20] sm:$0xff] %vm1582_vm1, %v1570_v23  ;;  %1588 = vst.msk [vmem:[%s3447_s30 + $0x28] sm:$0xff] %vm1582_vm1, %v1571_v24  ;;  %v1577_v20 = vadd.f32 %v1561_v29, %v3527_v44  ;;  %v1563_v31 = vld [vmem:[%s3447_s30 + $0x68] sm:$0xff]  ;;  %v1564_v32 = vld [vmem:[%s3447_s30 + $0x70] sm:$0xff]  ;;  %v1578_v33 = vadd.f32 %v1562_v30, %v3529_v52 }
 0x1f5   : > { %1589 = vst.msk [vmem:[%s3447_s30 + $0x30] sm:$0xff] %vm1582_vm1, %v1572_v42  ;;  %1590 = vst.msk [vmem:[%s3447_s30 + $0x38] sm:$0xff] %vm1582_vm1, %v1573_v49  ;;  %v1579_v27 = vadd.f32 %v1563_v31, %v3531_v60  ;;  %v1580_v34 = vadd.f32 %v1564_v32, %v3533_v4  ;;  %v1565_v36 = vld [vmem:[%s3447_s30 + $0x78] sm:$0xff] }
 0x1f6   : > { %1591 = vst.msk [vmem:[%s3447_s30 + $0x40] sm:$0xff] %vm1582_vm1, %v1574_v56  ;;  %1592 = vst.msk [vmem:[%s3447_s30 + $0x48] sm:$0xff] %vm1582_vm1, %v1575_v6  ;;  %v1581_v37 = vadd.f32 %v1565_v36, %v3535_v10 }
 0x1f7   : > { %1593 = vst.msk [vmem:[%s3447_s30 + $0x50] sm:$0xff] %vm1582_vm1, %v1576_v13  ;;  %1594 = vst.msk [vmem:[%s3447_s30 + $0x58] sm:$0xff] %vm1582_vm1, %v1577_v20 }
 0x1f8   : > { %1595 = vst.msk [vmem:[%s3447_s30 + $0x60] sm:$0xff] %vm1582_vm1, %v1578_v33  ;;  %1596 = vst.msk [vmem:[%s3447_s30 + $0x68] sm:$0xff] %vm1582_vm1, %v1579_v27 }
 0x1f9   : > { %1597 = vst.msk [vmem:[%s3447_s30 + $0x70] sm:$0xff] %vm1582_vm1, %v1580_v34  ;;  %1598 = vst.msk [vmem:[%s3447_s30 + $0x78] sm:$0xff] %vm1582_vm1, %v1581_v37 }
 0x1fa PF: > { %s12_s15 = sadd.s32 1, %s2901_s15   ;;  %s3709_s9 = sld [smem:[#allocation4_spill]] }
 0x1fb   : > { %p9_p13 = scmp.ge.s32.totalorder %s12_s15, 11   ;;  %s3710_s10 = sld [smem:[#allocation9_spill]] }
 0x1fc   : > { %s3711_s11 = sld [smem:[#allocation5_spill]] }
 0x1fd   : > { %s3712_s12 = sld [smem:[#allocation6_spill]]  ;;  %11 = sbr.rel (!%p9_p13) target bundleno = 6 (0x6), region = 308 }
 0x1fe   : > { %s3713_s13 = sld [smem:[#allocation7_spill]] }
 0x1ff   : > { %s3714_s14 = sld [smem:[#allocation8_spill]] }

</bundles_post_ra>
